<compile_context>
chip_gen: v5e
topology: v5e:2x2
jax: 0.10.0
libtpu: 0.0.40
codegen_flags: <defaults>
</compile_context>

<pallas_src>
import functools
import math

import jax
import jax.numpy as jnp
from jax.experimental import pallas as pl
from jax.experimental.pallas import tpu as pltpu


def _round_up(x, m):
    return ((x + m - 1) // m) * m


def _vmem_capacity_bytes():
    try:
        info = pltpu.get_tpu_info()
        cap = getattr(info, "vmem_capacity_bytes", None)
        if cap:
            return int(cap)
    except Exception:
        pass
    return 64 * 1024 * 1024            # conservative (v7x per-TC VMEM)


def _pick_block_n(D):
    """Largest of {512, 256, 128} whose padding of D stays <= ~12.5%."""
    Dp0 = _round_up(D, 128)
    for bn in (512, 256):
        Dp = _round_up(Dp0, bn)
        if Dp * 8 <= Dp0 * 9:
            return bn, Dp
    return 128, Dp0


def _pad2(x, rows, cols, dtype):
    x = jnp.asarray(x, jnp.float32)
    out = jnp.zeros((rows, cols), jnp.float32)
    out = out.at[: x.shape[0], : x.shape[1]].set(x)
    return out.astype(dtype)


def _bilinear_gate_kernel(p_ref, d_ref, wd_ref, wgdT_ref, bias_ref, out_ref,
                          *, block_n):
    # p_ref / d_ref : (tb, Dp)  f32   full-K LHS blocks (weights-outer grid ->
    #                                 constant across the inner batch loop)
    # wd_ref        : (Dp, 2*tn)      [WgpT_n | WbT_n] fused column slab
    # wgdT_ref      : (Dp, tn)
    # bias_ref      : (2, tn)   f32   row 0 = bgp tile, row 1 = bgd tile
    # out_ref       : (5, tb, tn) f32
    tn = block_n
    n = pl.program_id(0)
    off = pl.multiple_of(n * tn, 128)        # aligned free view into the LHS

    p_full = p_ref[...]
    d_full = d_ref[...]
    bias = bias_ref[...]

    # One fused MXU pass for the two matmuls sharing LHS `d`
    # (gate-p logits | d @ Wb.T), low-precision inputs, f32 accumulation.
    dd = jnp.dot(d_full.astype(wd_ref.dtype), wd_ref[...],
                 preferred_element_type=jnp.float32)
    gp = jax.nn.sigmoid(dd[:, :tn] + bias[0:1, :])
    d_wbT = dd[:, tn:]

    gd = jax.nn.sigmoid(
        jnp.dot(p_full.astype(wgdT_ref.dtype), wgdT_ref[...],
                preferred_element_type=jnp.float32) + bias[1:2, :])

    # Elementwise epilogue on the f32 column window of the resident LHS
    # (aligned (8,128)-tile slice of the already-loaded block -> no extra DMA).
    p_n = p_ref[:, pl.ds(off, tn)]
    d_n = d_ref[:, pl.ds(off, tn)]

    out_ref[0] = p_n * gp
    out_ref[1] = d_n * gd
    out_ref[2] = p_n * d_n
    out_ref[3] = jnp.abs(p_n - d_n)
    out_ref[4] = p_n * d_wbT                 # == einsum('bd,dk,bk->bd', p, Wb, d)


def make_bilinear_gate(wb, wgp, bgp, wgd, bgd, *,
                       weight_dtype=jnp.bfloat16, concat_output=True):
    """Packs the parameters once; returns apply(p, d) -> (B, 5*D)."""
    wb = jnp.asarray(wb, jnp.float32)
    D = wb.shape[0]
    wbytes = jnp.dtype(weight_dtype).itemsize

    # ---- VMEM budget (per chip generation) -------------------------------
    cap = _vmem_capacity_bytes()
    vmem_limit = min(int(cap * 0.85), 100 * 1024 * 1024)
    usable = vmem_limit - 2 * 1024 * 1024

    # ---- feature tile plan (minimize D padding, then fit weight slabs) ----
    block_n, Dp = _pick_block_n(D)
    while block_n > 128 and 6 * Dp * block_n * wbytes > (usable * 3) // 5:
        block_n //= 2
        Dp = _round_up(_round_up(D, 128), block_n)
    n_n = Dp // block_n
    # TODO(synk): for very large D even block_n=128 full-K weight slabs may
    # exceed VMEM; that regime needs a K (reduction) grid axis + accumulator.

    # ---- one-time weight repack (hoisted out of the per-call path) --------
    wbT = _pad2(wb.T, Dp, Dp, weight_dtype)
    wgpT = _pad2(jnp.asarray(wgp, jnp.float32).T, Dp, Dp, weight_dtype)
    wgdT = _pad2(jnp.asarray(wgd, jnp.float32).T, Dp, Dp, weight_dtype)
    # Interleave WgpT / WbT column tiles -> each grid step reads one
    # contiguous (Dp, 2*block_n) slab feeding a single MXU pass.
    wd = jnp.stack(
        [wgpT.reshape(Dp, n_n, block_n), wbT.reshape(Dp, n_n, block_n)],
        axis=2).reshape(Dp, 2 * Dp)
    bias = jnp.zeros((2, Dp), jnp.float32)
    bias = bias.at[0, :D].set(jnp.asarray(bgp, jnp.float32).reshape(D))
    bias = bias.at[1, :D].set(jnp.asarray(bgd, jnp.float32).reshape(D))
    packed = (wd, wgdT, bias)

    kernel = functools.partial(_bilinear_gate_kernel, block_n=block_n)
    weight_step_bytes = 6 * Dp * block_n * wbytes + 2 * 2 * block_n * 4

    def _plan_block_b(B):
        Bp0 = _round_up(max(B, 1), 8)
        bb = min(Bp0, 256)

        def step_bytes(bb_):
            act = 2 * 2 * bb_ * Dp * 4         # p + d full-K, double-buffered
            out = 2 * 5 * bb_ * block_n * 4    # output slab, double-buffered
            return weight_step_bytes + act + out

        while bb > 8 and step_bytes(bb) > usable:
            bb = max(8, ((bb // 2) // 8) * 8)
        # avoid >25% batch padding from an oversized batch tile
        while bb > 8 and _round_up(B, bb) * 4 > Bp0 * 5:
            bb = max(8, ((bb // 2) // 8) * 8)
        return bb

    @jax.jit
    def _apply(p, d, wd, wgdT, bias):
        if p.ndim == 3:
            p2 = jnp.squeeze(p, axis=1)
            d2 = jnp.squeeze(d, axis=1)
        else:
            p2, d2 = p, d
        p2 = p2.astype(jnp.float32)
        d2 = d2.astype(jnp.float32)
        B = p2.shape[0]

        block_b = _plan_block_b(B)
        Bp = _round_up(B, block_b)
        n_b = Bp // block_b

        p_p = jnp.zeros((Bp, Dp), jnp.float32).at[:B, :D].set(p2)
        d_p = jnp.zeros((Bp, Dp), jnp.float32).at[:B, :D].set(d2)

        cost = pl.CostEstimate(
            flops=2 * 3 * Bp * Dp * Dp,
            transcendentals=2 * Bp * Dp,
            bytes_accessed=(3 * Dp * Dp * wbytes      # weights, streamed once
                            + 2 * Dp * 4              # biases
                            + 2 * n_n * Bp * Dp * 4   # p/d re-read per n tile
                            + 5 * Bp * Dp * 4))       # output

        out = pl.pallas_call(
            kernel,
            grid=(n_n, n_b),                           # weight axis OUTER
            in_specs=[
                pl.BlockSpec((block_b, Dp), lambda n, b: (b, 0)),      # p full-K
                pl.BlockSpec((block_b, Dp), lambda n, b: (b, 0)),      # d full-K
                pl.BlockSpec((Dp, 2 * block_n), lambda n, b: (0, n)),  # [WgpT|WbT]
                pl.BlockSpec((Dp, block_n), lambda n, b: (0, n)),      # WgdT
                pl.BlockSpec((2, block_n), lambda n, b: (0, n)),       # [bgp;bgd]
            ],
            out_specs=pl.BlockSpec((5, block_b, block_n), lambda n, b: (0, b, n)),
            out_shape=jax.ShapeDtypeStruct((5, Bp, Dp), jnp.float32),
            compiler_params=pltpu.CompilerParams(
                dimension_semantics=("parallel", "parallel"),
                vmem_limit_bytes=vmem_limit),
            cost_estimate=cost,
        )(p_p, d_p, wd, wgdT, bias)

        out = out[:, :B, :D]                           # (5, B, D) fast layout
        if concat_output:
            # Only materialize the torch concat layout when required.
            out = jnp.transpose(out, (1, 0, 2)).reshape(B, 5 * D)
        return out

    def apply(p, d):
        return _apply(p, d, *packed)

    return apply


def _init_params(key, D):
    kwb, kwgp, kbgp, kwgd, kbgd = jax.random.split(key, 5)
    # Xavier uniform for Wb
    bound_wb = math.sqrt(6.0 / (D + D))
    wb = jax.random.uniform(kwb, (D, D), jnp.float32, -bound_wb, bound_wb)
    # PyTorch nn.Linear default init -> U(-1/sqrt(fan_in), 1/sqrt(fan_in))
    bound_lin = 1.0 / math.sqrt(D)
    wgp = jax.random.uniform(kwgp, (D, D), jnp.float32, -bound_lin, bound_lin)
    bgp = jax.random.uniform(kbgp, (D,), jnp.float32, -bound_lin, bound_lin)
    wgd = jax.random.uniform(kwgd, (D, D), jnp.float32, -bound_lin, bound_lin)
    bgd = jax.random.uniform(kbgd, (D,), jnp.float32, -bound_lin, bound_lin)
    return wb, wgp, bgp, wgd, bgd


def _reference(p, d, wb, wgp, bgp, wgd, bgd):
    p2 = jnp.squeeze(p, axis=1)
    d2 = jnp.squeeze(d, axis=1)
    bil = p2 * (d2 @ wb.T)
    gp = jax.nn.sigmoid(d2 @ wgp.T + bgp)
    gd = jax.nn.sigmoid(p2 @ wgd.T + bgd)
    return jnp.concatenate(
        [p2 * gp, d2 * gd, p2 * d2, jnp.abs(p2 - d2), bil], axis=-1)


if __name__ == "__main__":
    key = jax.random.PRNGKey(0)
    kp, kd, kparams = jax.random.split(key, 3)

    B, D = 2, 32
    p = jax.random.normal(kp, (B, 1, D), jnp.float32)
    d = jax.random.normal(kd, (B, 1, D), jnp.float32)
    wb, wgp, bgp, wgd, bgd = _init_params(kparams, D)

    ref = _reference(p, d, wb, wgp, bgp, wgd, bgd)

    # Exact f32 path (weight_dtype=float32): tight check against the reference.
    apply_f32 = make_bilinear_gate(wb, wgp, bgp, wgd, bgd,
                                   weight_dtype=jnp.float32)
    out_f32 = jax.block_until_ready(apply_f32(p, d))
    assert out_f32.shape == (B, 5 * D)
    assert jnp.allclose(out_f32, ref, atol=1e-5, rtol=1e-5)

    # Default fast path: bf16 weight streaming, f32 accumulation + epilogue.
    apply_bf16 = make_bilinear_gate(wb, wgp, bgp, wgd, bgd)
    out_bf16 = jax.block_until_ready(apply_bf16(p, d))
    assert out_bf16.shape == (B, 5 * D)
    assert jnp.allclose(out_bf16, ref, atol=5e-2, rtol=5e-2)

    print("KERNEL_OK")
</pallas_src>

<mosaic_0001>
module attributes {stable_mosaic.version = 11 : i64} {
  func.func @_bilinear_gate_kernel(%arg0: i32, %arg1: i32, %arg2: memref<8x128xf32, #tpu.memory_space<vmem>>, %arg3: memref<8x128xf32, #tpu.memory_space<vmem>>, %arg4: memref<128x256xf32, #tpu.memory_space<vmem>>, %arg5: memref<128x128xf32, #tpu.memory_space<vmem>>, %arg6: memref<2x128xf32, #tpu.memory_space<vmem>>, %arg7: memref<5x8x128xf32, #tpu.memory_space<vmem>>) attributes {dimension_semantics = [#tpu.dimension_semantics<parallel>, #tpu.dimension_semantics<parallel>], iteration_bounds = array<i64: 1, 1>, scalar_prefetch = 0 : i64, scratch_operands = 0 : i64, tpu.core_type = #tpu.core_type<tc>, window_params = [{transform_indices = @transform_0, window_bounds = array<i64: 8, 128>}, {transform_indices = @transform_1, window_bounds = array<i64: 8, 128>}, {transform_indices = @transform_2, window_bounds = array<i64: 128, 256>}, {transform_indices = @transform_3, window_bounds = array<i64: 128, 128>}, {transform_indices = @transform_4, window_bounds = array<i64: 2, 128>}, {transform_indices = @transform_5, window_bounds = array<i64: 5, 8, 128>}]} {
    %c128_i32 = arith.constant 128 : i32
    %0 = arith.muli %arg0, %c128_i32 : i32
    %1 = tpu.assume_multiple %0, 128 : i32
    %c0 = arith.constant 0 : index
    %c0_0 = arith.constant 0 : index
    %2 = vector.load %arg2[%c0, %c0_0] : memref<8x128xf32, #tpu.memory_space<vmem>>, vector<8x128xf32>
    %c0_1 = arith.constant 0 : index
    %c0_2 = arith.constant 0 : index
    %3 = vector.load %arg3[%c0_1, %c0_2] : memref<8x128xf32, #tpu.memory_space<vmem>>, vector<8x128xf32>
    %c0_3 = arith.constant 0 : index
    %c0_4 = arith.constant 0 : index
    %4 = vector.load %arg6[%c0_3, %c0_4] : memref<2x128xf32, #tpu.memory_space<vmem>>, vector<2x128xf32>
    %c0_5 = arith.constant 0 : index
    %c0_6 = arith.constant 0 : index
    %5 = vector.load %arg4[%c0_5, %c0_6] : memref<128x256xf32, #tpu.memory_space<vmem>>, vector<128x256xf32>
    %cst = arith.constant dense<0.000000e+00> : vector<8x256xf32>
    %6 = tpu.matmul %3, %5, %cst {dimension_numbers = #tpu.dot_dimension_numbers<[1], [0], [0], [1], [0, 0, 1, 1], [], []>} : vector<8x128xf32>, vector<128x256xf32>, vector<8x256xf32> -> vector<8x256xf32>
    %7 = vector.extract_strided_slice %6 {offsets = [0, 0], sizes = [8, 128], strides = [1, 1]} : vector<8x256xf32> to vector<8x128xf32>
    %8 = vector.extract_strided_slice %4 {offsets = [0, 0], sizes = [1, 128], strides = [1, 1]} : vector<2x128xf32> to vector<1x128xf32>
    %9 = vector.broadcast %8 : vector<1x128xf32> to vector<8x128xf32>
    %10 = arith.addf %7, %9 : vector<8x128xf32>
    %11 = arith.negf %10 : vector<8x128xf32>
    %12 = math.exp %11 : vector<8x128xf32>
    %cst_7 = arith.constant 1.000000e+00 : f32
    %13 = vector.broadcast %cst_7 : f32 to vector<8x128xf32>
    %14 = arith.addf %13, %12 : vector<8x128xf32>
    %15 = arith.divf %13, %14 : vector<8x128xf32>
    %16 = vector.extract_strided_slice %6 {offsets = [0, 128], sizes = [8, 128], strides = [1, 1]} : vector<8x256xf32> to vector<8x128xf32>
    %c0_8 = arith.constant 0 : index
    %c0_9 = arith.constant 0 : index
    %17 = vector.load %arg5[%c0_8, %c0_9] : memref<128x128xf32, #tpu.memory_space<vmem>>, vector<128x128xf32>
    %cst_10 = arith.constant dense<0.000000e+00> : vector<8x128xf32>
    %18 = tpu.matmul %2, %17, %cst_10 {dimension_numbers = #tpu.dot_dimension_numbers<[1], [0], [0], [1], [0, 0, 1, 1], [], []>} : vector<8x128xf32>, vector<128x128xf32>, vector<8x128xf32> -> vector<8x128xf32>
    %19 = vector.extract_strided_slice %4 {offsets = [1, 0], sizes = [1, 128], strides = [1, 1]} : vector<2x128xf32> to vector<1x128xf32>
    %20 = vector.broadcast %19 : vector<1x128xf32> to vector<8x128xf32>
    %21 = arith.addf %18, %20 : vector<8x128xf32>
    %22 = arith.negf %21 : vector<8x128xf32>
    %23 = math.exp %22 : vector<8x128xf32>
    %cst_11 = arith.constant 1.000000e+00 : f32
    %24 = vector.broadcast %cst_11 : f32 to vector<8x128xf32>
    %25 = arith.addf %24, %23 : vector<8x128xf32>
    %26 = arith.divf %24, %25 : vector<8x128xf32>
    %c0_12 = arith.constant 0 : index
    %27 = arith.index_cast %1 : i32 to index
    %28 = vector.load %arg2[%c0_12, %27] : memref<8x128xf32, #tpu.memory_space<vmem>>, vector<8x128xf32>
    %c0_13 = arith.constant 0 : index
    %29 = arith.index_cast %1 : i32 to index
    %30 = vector.load %arg3[%c0_13, %29] : memref<8x128xf32, #tpu.memory_space<vmem>>, vector<8x128xf32>
    %31 = arith.mulf %28, %15 : vector<8x128xf32>
    %c0_14 = arith.constant 0 : index
    %c0_15 = arith.constant 0 : index
    %c0_16 = arith.constant 0 : index
    %32 = vector.load %arg7[%c0_14, %c0_15, %c0_16] : memref<5x8x128xf32, #tpu.memory_space<vmem>>, vector<1x8x128xf32>
    %33 = vector.shape_cast %32 : vector<1x8x128xf32> to vector<8x128xf32>
    %34 = vector.shape_cast %31 : vector<8x128xf32> to vector<1x8x128xf32>
    tpu.vector_store %arg7[%c0_14, %c0_15, %c0_16], %34 {strides = array<i32>} : memref<5x8x128xf32, #tpu.memory_space<vmem>>, vector<1x8x128xf32>,
    %35 = arith.mulf %30, %26 : vector<8x128xf32>
    %c1 = arith.constant 1 : index
    %c0_17 = arith.constant 0 : index
    %c0_18 = arith.constant 0 : index
    %36 = vector.load %arg7[%c1, %c0_17, %c0_18] : memref<5x8x128xf32, #tpu.memory_space<vmem>>, vector<1x8x128xf32>
    %37 = vector.shape_cast %36 : vector<1x8x128xf32> to vector<8x128xf32>
    %38 = vector.shape_cast %35 : vector<8x128xf32> to vector<1x8x128xf32>
    tpu.vector_store %arg7[%c1, %c0_17, %c0_18], %38 {strides = array<i32>} : memref<5x8x128xf32, #tpu.memory_space<vmem>>, vector<1x8x128xf32>,
    %39 = arith.mulf %28, %30 : vector<8x128xf32>
    %c2 = arith.constant 2 : index
    %c0_19 = arith.constant 0 : index
    %c0_20 = arith.constant 0 : index
    %40 = vector.load %arg7[%c2, %c0_19, %c0_20] : memref<5x8x128xf32, #tpu.memory_space<vmem>>, vector<1x8x128xf32>
    %41 = vector.shape_cast %40 : vector<1x8x128xf32> to vector<8x128xf32>
    %42 = vector.shape_cast %39 : vector<8x128xf32> to vector<1x8x128xf32>
    tpu.vector_store %arg7[%c2, %c0_19, %c0_20], %42 {strides = array<i32>} : memref<5x8x128xf32, #tpu.memory_space<vmem>>, vector<1x8x128xf32>,
    %43 = arith.subf %28, %30 : vector<8x128xf32>
    %44 = math.absf %43 : vector<8x128xf32>
    %c3 = arith.constant 3 : index
    %c0_21 = arith.constant 0 : index
    %c0_22 = arith.constant 0 : index
    %45 = vector.load %arg7[%c3, %c0_21, %c0_22] : memref<5x8x128xf32, #tpu.memory_space<vmem>>, vector<1x8x128xf32>
    %46 = vector.shape_cast %45 : vector<1x8x128xf32> to vector<8x128xf32>
    %47 = vector.shape_cast %44 : vector<8x128xf32> to vector<1x8x128xf32>
    tpu.vector_store %arg7[%c3, %c0_21, %c0_22], %47 {strides = array<i32>} : memref<5x8x128xf32, #tpu.memory_space<vmem>>, vector<1x8x128xf32>,
    %48 = arith.mulf %28, %16 : vector<8x128xf32>
    %c4 = arith.constant 4 : index
    %c0_23 = arith.constant 0 : index
    %c0_24 = arith.constant 0 : index
    %49 = vector.load %arg7[%c4, %c0_23, %c0_24] : memref<5x8x128xf32, #tpu.memory_space<vmem>>, vector<1x8x128xf32>
    %50 = vector.shape_cast %49 : vector<1x8x128xf32> to vector<8x128xf32>
    %51 = vector.shape_cast %48 : vector<8x128xf32> to vector<1x8x128xf32>
    tpu.vector_store %arg7[%c4, %c0_23, %c0_24], %51 {strides = array<i32>} : memref<5x8x128xf32, #tpu.memory_space<vmem>>, vector<1x8x128xf32>,
    return
  }
  func.func @transform_0(%arg0: i32, %arg1: i32) -> (i32, i32) {
    %c0_i32 = arith.constant 0 : i32
    %c0_i32_0 = arith.constant 0 : i32
    return %arg1, %c0_i32 : i32, i32
  }
  func.func @transform_1(%arg0: i32, %arg1: i32) -> (i32, i32) {
    %c0_i32 = arith.constant 0 : i32
    %c0_i32_0 = arith.constant 0 : i32
    return %arg1, %c0_i32 : i32, i32
  }
  func.func @transform_2(%arg0: i32, %arg1: i32) -> (i32, i32) {
    %c0_i32 = arith.constant 0 : i32
    %c0_i32_0 = arith.constant 0 : i32
    return %c0_i32, %arg0 : i32, i32
  }
  func.func @transform_3(%arg0: i32, %arg1: i32) -> (i32, i32) {
    %c0_i32 = arith.constant 0 : i32
    %c0_i32_0 = arith.constant 0 : i32
    return %c0_i32, %arg0 : i32, i32
  }
  func.func @transform_4(%arg0: i32, %arg1: i32) -> (i32, i32) {
    %c0_i32 = arith.constant 0 : i32
    %c0_i32_0 = arith.constant 0 : i32
    return %c0_i32, %arg0 : i32, i32
  }
  func.func @transform_5(%arg0: i32, %arg1: i32) -> (i32, i32, i32) {
    %c0_i32 = arith.constant 0 : i32
    %c0_i32_0 = arith.constant 0 : i32
    return %c0_i32, %arg1, %arg0 : i32, i32, i32
  }
}

</mosaic_0001>

<bundles_post_ra>
// kernel: _apply.1
= control target key start
LH: loop header
LB: loop body
LE: loop exit
PB: predicated region body
PF: predicated region fallthrough
CT: control target
= control target key end

     0   :  { %10 = vsyncpa [#allocation3], 0  ;;  %s386_s0 = inlined_call_operand.vmem [shape: f32[8,128], index: 0, kind: input, shape index: {}]   ;;  %s387_s1 = inlined_call_operand.vmem [shape: f32[8,128], index: 1, kind: input, shape index: {}]   ;;  %s388_s2 = inlined_call_operand.hbm [shape: f32[128,256], index: 2, kind: input, shape index: {}]   ;;  %s389_s3 = inlined_call_operand.hbm [shape: f32[128,128], index: 3, kind: input, shape index: {}]   ;;  %s390_s4 = inlined_call_operand.vmem [shape: f32[2,128], index: 4, kind: input, shape index: {}]   ;;  %s391_s5 = inlined_call_operand.vmem [shape: f32[5,8,128], index: 5, kind: output, shape index: {}]  }
   0x1   :  { %s20_s20 = sshll.u32 %s388_s2, 4  ;;  %s21_s20 = int_to_ptr.hbm [resolvable:$true] %s20_s20 }
   0x2   :  { %11 = vsyncpa [#allocation5], 0  ;;  %s306_s21 = smov [#allocation2]   ;;  %s33_s25 = sshll.u32 %s389_s3, 4  ;;  %s34_s25 = int_to_ptr.hbm [resolvable:$true] %s33_s25 }
   0x3   :  { %s22_s22 = sshll.u32 %s306_s21, 4  ;;  %s307_s26 = smov 256   ;;  %s23_s22 = int_to_ptr.vmem [resolvable:$true] %s22_s22 }
   0x4   :  { %s308_s27 = smov 16   ;;  %s309_s28 = smov [#allocation4]  }
   0x5   :  { %28 = dma.hbm_to_vmem [thread:$0]  %s21_s20, 4096, %s23_s22, [#allocation3], %s307_s26, %s307_s26, %s308_s27  }
   0x6   :  { %s35_s29 = sshll.u32 %s309_s28, 4  ;;  %s310_s30 = smov 128   ;;  %s36_s29 = int_to_ptr.vmem [resolvable:$true] %s35_s29 }
   0x7   :  { %s311_s6 = smov 8  }
   0x8   :  { %41 = dma.hbm_to_vmem [thread:$0]  %s34_s25, 2048, %s36_s29, [#allocation5], %s310_s30, %s310_s30, %s311_s6  }
   0x9   :  { %302 = dma.done.wait [#allocation3], 4096  }
   0xa   :  { %303 = vsyncadd [#allocation3], 4294963200 }
   0xb   :  { %304 = dma.done.wait [#allocation5], 2048  }
   0xc   :  { %305 = vsyncadd [#allocation5], 4294965248  ;;  %v86_v0 = vld [vmem:[#allocation2 + $0xf0] sm:$0xff]  ;;  %v164_v1 = vld [vmem:[#allocation4 + $0x78] sm:$0xff] }
   0xd   :  { %v84_v2 = vld [vmem:[#allocation2 + $0xe0] sm:$0xff]  ;;  %88 = vmatpush.msra.mxu0 %v86_v0  ;;  %166 = vmatpush.msra.mxu2 %v164_v1  ;;  %v163_v3 = vld [vmem:[#allocation4 + $0x70] sm:$0xff]  ;;  %v162_v5 = vld [vmem:[#allocation4 + $0x68] sm:$0xff] }
   0xe   :  { %v82_v4 = vld [vmem:[#allocation2 + $0xd0] sm:$0xff]  ;;  %v80_v6 = vld [vmem:[#allocation2 + $0xc0] sm:$0xff]  ;;  %v160_v9 = vld [vmem:[#allocation4 + $0x58] sm:$0xff] }
   0xf   :  { %89 = vmatpush.msra.mxu0 %v84_v2  ;;  %167 = vmatpush.msra.mxu2 %v163_v3  ;;  %v161_v7 = vld [vmem:[#allocation4 + $0x60] sm:$0xff]  ;;  %v78_v8 = vld [vmem:[#allocation2 + $0xb0] sm:$0xff]  ;;  %v158_v13 = vld [vmem:[#allocation4 + $0x48] sm:$0xff] }
  0x10   :  { %v76_v10 = vld [vmem:[#allocation2 + $0xa0] sm:$0xff]  ;;  %v159_v11 = vld [vmem:[#allocation4 + $0x50] sm:$0xff]  ;;  %v87_v14 = vld [vmem:[#allocation2 + $0xf8] sm:$0xff] }
  0x11   :  { %90 = vmatpush.msra.mxu0 %v82_v4  ;;  %168 = vmatpush.msra.mxu2 %v162_v5  ;;  %v74_v12 = vld [vmem:[#allocation2 + $0x90] sm:$0xff]  ;;  %v85_v15 = vld [vmem:[#allocation2 + $0xe8] sm:$0xff]  ;;  %v72_v16 = vld [vmem:[#allocation2 + $0x80] sm:$0xff] }
  0x12   :  { %v157_v17 = vld [vmem:[#allocation4 + $0x40] sm:$0xff]  ;;  %108 = vmatpush.msra.mxu1 %v87_v14  ;;  %v83_v18 = vld [vmem:[#allocation2 + $0xd8] sm:$0xff]  ;;  %v70_v19 = vld [vmem:[#allocation2 + $0x70] sm:$0xff] }
  0x13   :  { %91 = vmatpush.msra.mxu0 %v80_v6  ;;  %169 = vmatpush.msra.mxu2 %v161_v7  ;;  %v156_v20 = vld [vmem:[#allocation4 + $0x38] sm:$0xff]  ;;  %v81_v21 = vld [vmem:[#allocation2 + $0xc8] sm:$0xff]  ;;  %v68_v22 = vld [vmem:[#allocation2 + $0x60] sm:$0xff] }
  0x14   :  { %109 = vmatpush.msra.mxu1 %v85_v15  ;;  %v155_v23 = vld [vmem:[#allocation4 + $0x30] sm:$0xff]  ;;  %v79_v24 = vld [vmem:[#allocation2 + $0xb8] sm:$0xff]  ;;  %v154_v26 = vld [vmem:[#allocation4 + $0x28] sm:$0xff] }
  0x15   :  { %92 = vmatpush.msra.mxu0 %v78_v8  ;;  %170 = vmatpush.msra.mxu2 %v160_v9  ;;  %v66_v25 = vld [vmem:[#allocation2 + $0x50] sm:$0xff]  ;;  %v77_v27 = vld [vmem:[#allocation2 + $0xa8] sm:$0xff]  ;;  %v64_v28 = vld [vmem:[#allocation2 + $0x40] sm:$0xff] }
  0x16   :  { %110 = vmatpush.msra.mxu1 %v83_v18  ;;  %v153_v29 = vld [vmem:[#allocation4 + $0x20] sm:$0xff]  ;;  %v75_v30 = vld [vmem:[#allocation2 + $0x98] sm:$0xff]  ;;  %v62_v31 = vld [vmem:[#allocation2 + $0x30] sm:$0xff] }
  0x17   :  { %93 = vmatpush.msra.mxu0 %v76_v10  ;;  %171 = vmatpush.msra.mxu2 %v159_v11  ;;  %v152_v32 = vld [vmem:[#allocation4 + $0x18] sm:$0xff]  ;;  %v73_v33 = vld [vmem:[#allocation2 + $0x88] sm:$0xff]  ;;  %v60_v34 = vld [vmem:[#allocation2 + $0x20] sm:$0xff] }
  0x18   :  { %111 = vmatpush.msra.mxu1 %v81_v21  ;;  %v151_v35 = vld [vmem:[#allocation4 + $0x10] sm:$0xff]  ;;  %v71_v36 = vld [vmem:[#allocation2 + $0x78] sm:$0xff]  ;;  %v150_v38 = vld [vmem:[#allocation4 + $0x8] sm:$0xff] }
  0x19   :  { %94 = vmatpush.msra.mxu0 %v74_v12  ;;  %172 = vmatpush.msra.mxu2 %v158_v13  ;;  %v58_v37 = vld [vmem:[#allocation2 + $0x10] sm:$0xff]  ;;  %v69_v39 = vld [vmem:[#allocation2 + $0x68] sm:$0xff]  ;;  %v56_v40 = vld [vmem:[#allocation2] sm:$0xff] }
  0x1a   :  { %112 = vmatpush.msra.mxu1 %v79_v24  ;;  %v149_v41 = vld [vmem:[#allocation4] sm:$0xff]  ;;  %v67_v44 = vld [vmem:[#allocation2 + $0x58] sm:$0xff]  ;;  %v65_v45 = vld [vmem:[#allocation2 + $0x48] sm:$0xff] }
  0x1b   :  { %95 = vmatpush.msra.mxu0 %v72_v16  ;;  %173 = vmatpush.msra.mxu2 %v157_v17  ;;  %v351_v42 = vld [vmem:[%s387_s1] sm:$0xff]  ;;  %v63_v46 = vld [vmem:[#allocation2 + $0x38] sm:$0xff]  ;;  %v61_v47 = vld [vmem:[#allocation2 + $0x28] sm:$0xff] }
  0x1c   :  { %113 = vmatpush.msra.mxu1 %v77_v27  ;;  %v356_v43 = vld [vmem:[%s386_s0] sm:$0xff]  ;;  %v59_v48 = vld [vmem:[#allocation2 + $0x18] sm:$0xff]  ;;  %v57_v49 = vld [vmem:[#allocation2 + $0x8] sm:$0xff] }
  0x1d   :  { %96 = vmatpush.msra.mxu0 %v70_v19  ;;  %174 = vmatpush.msra.mxu2 %v156_v20  ;;  %v55_v50 = vld [vmem:[%s390_s4] sm:$0x3]  ;;  %v219_v56 = vsub.f32 %v356_v43, %v351_v42  ;;  %v216_v57 = vmul.f32 %v351_v42, %v356_v43 }
  0x1e   :  { %114 = vmatpush.msra.mxu1 %v75_v30  ;;  %v128_v51 = vperm.slane %v55_v50, 0  ;;  %v165_v55 = vperm.slane %v55_v50, 1 }
  0x1f   :  { %97 = vmatpush.msra.mxu0 %v68_v22  ;;  %175 = vmatpush.msra.mxu2 %v155_v23  ;;  %v220_v58 = vand.u32 2147483647, %v219_v56  ;;  %237 = vst [vmem:[%s391_s5 + $0x10] sm:$0xff] %v216_v57 }
  0x20   :  { %115 = vmatpush.msra.mxu1 %v73_v33 }
  0x21   :  { %98 = vmatpush.msra.mxu0 %v66_v25  ;;  %176 = vmatpush.msra.mxu2 %v154_v26  ;;  %238 = vst [vmem:[%s391_s5 + $0x18] sm:$0xff] %v220_v58 }
  0x22   :  { %116 = vmatpush.msra.mxu1 %v71_v36 }
  0x23   :  { %99 = vmatpush.msra.mxu0 %v64_v28  ;;  %177 = vmatpush.msra.mxu2 %v153_v29 }
  0x24   :  { %117 = vmatpush.msra.mxu1 %v69_v39 }
  0x25   :  { %100 = vmatpush.msra.mxu0 %v62_v31  ;;  %178 = vmatpush.msra.mxu2 %v152_v32 }
  0x26   :  { %118 = vmatpush.msra.mxu1 %v67_v44 }
  0x27   :  { %101 = vmatpush.msra.mxu0 %v60_v34  ;;  %179 = vmatpush.msra.mxu2 %v151_v35 }
  0x28   :  { %119 = vmatpush.msra.mxu1 %v65_v45 }
  0x29   :  { %102 = vmatpush.msra.mxu0 %v58_v37  ;;  %180 = vmatpush.msra.mxu2 %v150_v38 }
  0x2a   :  { %120 = vmatpush.msra.mxu1 %v63_v46 }
  0x2b   :  { %103 = vmatpush.msra.mxu0 %v56_v40  ;;  %181 = vmatpush.msra.mxu2 %v149_v41 }
  0x2c   :  { %104 = vmatmul.f32.vlgmr.msra.gmra.mxu0 %v351_v42  ;;  %182 = vmatmul.f32.vlgmr.msra.gmra.mxu2 %v356_v43 }
  0x2d   :  { %121 = vmatpush.msra.mxu1 %v61_v47 }
  0x2f   :  { %122 = vmatpush.msra.mxu1 %v59_v48 }
  0x31   :  { %123 = vmatpush.msra.mxu1 %v57_v49 }
  0x32   :  { %124 = vmatmul.f32.vlgmr.msra.gmra.mxu1 %v351_v42 }
  0xa9   :  { %v105_v52 = vpop.f32.mrf.mxu0 }
  0xaa   :  { %v129_v53 = vadd.f32 %v128_v51, %v105_v52 }
  0xac   :  { %v234_v54 = vmul.f32 -1.442695, %v129_v53 }
  0xae   :  { %246 = vpow2.f32 %v234_v54 }
  0xaf   :  { %v183_v59 = vpop.f32.mrf.mxu2  ;;  %v125_v0 = vpop.f32.mrf.mxu1 }
  0xb0   :  { %v184_v60 = vadd.f32 %v183_v59, %v165_v55  ;;  %v223_v1 = vmul.f32 %v125_v0, %v356_v43 }
  0xb2   :  { %v235_v61 = vmul.f32 -1.442695, %v184_v60  ;;  %239 = vst [vmem:[%s391_s5 + $0x20] sm:$0xff] %v223_v1 }
  0xb4   :  { %v247_v62 = vpop.eup %246  ;;  %248 = vpow2.f32 %v235_v61 }
  0xb5   :  { %v133_v63 = vadd.f32 1.0, %v247_v62 }
  0xb7   :  { %250 = vrcp.f32 %v133_v63  ;;  %v145_v7 = vand.u32 2147483648, %v133_v63  ;;  %vm139_vm0 = vweird.f32 %v133_v63  ;;  %v143_v9 = vand.u32 2147483647, %v133_v63 }
  0xb9   :  { %v146_v13 = vor.u32 1.1754944e-38, %v145_v7  ;;  %vm144_vm3 = vcmp.eq.f32.partialorder %v143_v9, 8.507059e+37 }
  0xba   :  { %v249_v2 = vpop.eup %248 }
  0xbb   :  { %v189_v3 = vadd.f32 1.0, %v249_v2 }
  0xbd   :  { %v251_v4 = vpop.eup %250  ;;  %252 = vrcp.f32 %v189_v3  ;;  %v201_v16 = vand.u32 2147483648, %v189_v3  ;;  %v199_v19 = vand.u32 2147483647, %v189_v3  ;;  %vm195_vm5 = vweird.f32 %v189_v3 }
  0xbe   :  { %v135_v5 = vmul.f32 %v251_v4, %v133_v63  ;;  %vm140_vm1 = vweird.f32 %v251_v4 }
  0xbf   :  { %vm141_vm2 = vmor %vm139_vm0, %vm140_vm1  ;;  %v202_v22 = vor.u32 1.1754944e-38, %v201_v16  ;;  %vm200_vm7 = vcmp.eq.f32.partialorder %v199_v19, 8.507059e+37 }
  0xc0   :  { %v136_v6 = vsub.f32 1.0, %v135_v5 }
  0xc2   :  { %v137_v8 = vmul.f32 %v251_v4, %v136_v6 }
  0xc3   :  { %v253_v10 = vpop.eup %252 }
  0xc4   :  { %v191_v11 = vmul.f32 %v253_v10, %v189_v3  ;;  %v138_v12 = vadd.f32 %v251_v4, %v137_v8  ;;  %vm196_vm4 = vweird.f32 %v253_v10 }
  0xc5   :  { %vm197_vm6 = vmor %vm195_vm5, %vm196_vm4 }
  0xc6   :  { %v192_v14 = vsub.f32 1.0, %v191_v11  ;;  %v142_v15 = vsel %vm141_vm2, %v251_v4, %v138_v12 }
  0xc7   :  { %v147_v17 = vsel %vm144_vm3, %v146_v13, %v142_v15 }
  0xc8   :  { %v193_v18 = vmul.f32 %v253_v10, %v192_v14  ;;  %v211_v20 = vmul.f32 %v147_v17, %v356_v43 }
  0xca   :  { %v194_v21 = vadd.f32 %v253_v10, %v193_v18  ;;  %212 = vst [vmem:[%s391_s5] sm:$0xff] %v211_v20 }
  0xcc   :  { %v198_v23 = vsel %vm197_vm6, %v253_v10, %v194_v21 }
  0xcd   :  { %v203_v24 = vsel %vm200_vm7, %v202_v22, %v198_v23 }
  0xce   :  { %v213_v25 = vmul.f32 %v203_v24, %v351_v42 }
  0xd0   :  { %236 = vst [vmem:[%s391_s5 + $0x8] sm:$0xff] %v213_v25 }
  0xd1   :  { %230 = vsyncpa [#allocation3], 1 }
  0xd2   :  { %231 = vsyncpa [#allocation5], 1 }

</bundles_post_ra>
